<compile_context>
chip_gen: v7x
topology: tpu7x:2x2x1
jax: 0.10.0
libtpu: 0.0.40
codegen_flags: <defaults>
</compile_context>

<pallas_src>
import functools

import jax
import jax.numpy as jnp
from jax import lax
from jax.experimental import pallas as pl
from jax.experimental.pallas import tpu as pltpu


# --------------------------------------------------------------------------
# Helpers.
# --------------------------------------------------------------------------
def _pick_tile(n, pref):
    """Largest candidate tile <= pref that divides n (falls back to n)."""
    for cand in (2048, 1024, 512, 256, 128, 64, 32, 16, 8):
        if cand <= pref and cand <= n and n % cand == 0:
            return cand
    return n


def _has_bf16_eup():
    """True on TPU generations with a bf16 EUP/VPU (v6e, v7x)."""
    try:
        kind = jax.devices()[0].device_kind.lower()
    except Exception:
        return False
    if "tpu" not in kind and not kind.startswith("v"):
        return False          # CPU / interpret backend -> keep fp32 math
    for older in ("v2", "v3", "v4", "v5"):
        if older in kind:
            return False      # no bf16 EUP on v5e and older
    return True


# --------------------------------------------------------------------------
# Stage 1: fused Q/K/V projection (one wide MXU matmul per row tile).
# --------------------------------------------------------------------------
def _qkv_proj_kernel(x_ref, w_ref, q_ref, k_ref, v_ref):
    d_out = q_ref.shape[-1]
    # (TM, d_in) @ (d_in, 3*d_out) -> fp32 accumulation, single MXU pipeline.
    qkv = jnp.dot(x_ref[...], w_ref[...], preferred_element_type=jnp.float32)
    q_ref[...] = qkv[:, :d_out].astype(q_ref.dtype)
    k_ref[...] = qkv[:, d_out:2 * d_out].astype(k_ref.dtype)
    v_ref[...] = qkv[:, 2 * d_out:3 * d_out].astype(v_ref.dtype)


def _qkv_projection(x2d, w_fused, d_out, out_dtype, tm):
    rows, d_in = x2d.shape
    three = w_fused.shape[1]
    row_spec = pl.BlockSpec((tm, d_in), lambda i: (i, 0))
    w_spec = pl.BlockSpec((d_in, three), lambda i: (0, 0))   # weights resident
    out_spec = pl.BlockSpec((tm, d_out), lambda i: (i, 0))
    out_sds = jax.ShapeDtypeStruct((rows, d_out), out_dtype)
    return pl.pallas_call(
        _qkv_proj_kernel,
        out_shape=(out_sds, out_sds, out_sds),
        grid_spec=pltpu.PrefetchScalarGridSpec(
            num_scalar_prefetch=0,
            grid=(rows // tm,),
            in_specs=[row_spec, w_spec],
            out_specs=[out_spec, out_spec, out_spec],
        ),
        compiler_params=pltpu.CompilerParams(
            dimension_semantics=("parallel",),
            vmem_limit_bytes=40 * 1024 * 1024),
    )(x2d, w_fused)


# --------------------------------------------------------------------------
# Stage 2: flash-style causal attention with online softmax.
# --------------------------------------------------------------------------
def _flash_attn_kernel(q_ref, k_ref, v_ref, o_ref, m_sc, l_sc, acc_sc, *,
                       exp_dtype):
    tq = q_ref.shape[1]
    tk = k_ref.shape[1]
    qi = pl.program_id(1)
    ki = pl.program_id(2)
    nk = pl.num_programs(2)

    @pl.when(ki == 0)
    def _init():
        m_sc[...] = jnp.full_like(m_sc, -jnp.inf)
        l_sc[...] = jnp.zeros_like(l_sc)
        acc_sc[...] = jnp.zeros_like(acc_sc)

    q_start = qi * tq
    k_start = ki * tk

    # Skip KV tiles that lie entirely above the causal diagonal (their DMA is
    # also skipped via the clamped kv index_map in _flash_attention).
    @pl.when(k_start <= q_start + tq - 1)
    def _compute():
        q = q_ref[0]                       # (TQ, d), scale already in Wq
        k = k_ref[0]                       # (TK, d)
        v = v_ref[0]                       # (TK, d)

        # Q @ K^T contracting the feature dim; fp32 accumulation on the MXU.
        s = lax.dot_general(q, k, (((1,), (1,)), ((), ())),
                            preferred_element_type=jnp.float32)  # (TQ, TK)

        def _online_softmax_update(scores):
            m_prev = m_sc[...]
            m_new = jnp.maximum(m_prev, jnp.max(scores, axis=-1, keepdims=True))
            alpha = jnp.exp(m_prev - m_new)
            # bf16 exp on v6e/v7x (bf16 EUP); fp32 elsewhere.
            p = jnp.exp((scores - m_new).astype(exp_dtype))
            l_sc[...] = alpha * l_sc[...] + jnp.sum(
                p.astype(jnp.float32), axis=-1, keepdims=True)
            acc_sc[...] = alpha * acc_sc[...] + jnp.dot(
                p.astype(v.dtype), v, preferred_element_type=jnp.float32)
            m_sc[...] = m_new

        # Only tiles straddling the diagonal pay for the iota/where mask.
        needs_mask = k_start + tk - 1 > q_start

        @pl.when(needs_mask)
        def _diagonal_tile():
            row = q_start + lax.broadcasted_iota(jnp.int32, (tq, tk), 0)
            col = k_start + lax.broadcasted_iota(jnp.int32, (tq, tk), 1)
            _online_softmax_update(jnp.where(col > row, -jnp.inf, s))

        @pl.when(jnp.logical_not(needs_mask))
        def _interior_tile():
            _online_softmax_update(s)

    # TODO(synk): training-mode dropout on the attention weights would use
    # pltpu.prng_seed + pltpu.prng_random_bits inside _compute; eval mode is a
    # no-op so it is intentionally omitted.

    @pl.when(ki == nk - 1)
    def _finalize():
        # Exact divide (runs once per query tile; approx reciprocal cost the
        # previous version its accuracy budget).
        o_ref[0] = (acc_sc[...] / l_sc[...]).astype(o_ref.dtype)


def _flash_attention(q, k, v, out_dtype, tq, tk, exp_dtype):
    b, t, d = q.shape
    grid = (b, t // tq, t // tk)

    def kv_index_map(bi, qi, ki):
        # Clamp to the last KV tile the causal mask can reach for this query
        # tile: fully-masked grid steps map to the same block index as the
        # previous step, so Pallas skips their K/V HBM DMA entirely.
        last = (qi * tq + tq - 1) // tk
        return (bi, jnp.minimum(ki, last), 0)

    q_spec = pl.BlockSpec((1, tq, d), lambda bi, qi, ki: (bi, qi, 0))
    kv_spec = pl.BlockSpec((1, tk, d), kv_index_map)
    # TODO(synk): if d_out < 128, packing heads / padding d_out would make the
    # output stores lane-dense; left out to keep single-head semantics simple.
    o_spec = pl.BlockSpec((1, tq, d), lambda bi, qi, ki: (bi, qi, 0))

    kernel = functools.partial(_flash_attn_kernel, exp_dtype=exp_dtype)
    return pl.pallas_call(
        kernel,
        out_shape=jax.ShapeDtypeStruct((b, t, d), out_dtype),
        grid_spec=pltpu.PrefetchScalarGridSpec(
            num_scalar_prefetch=0,
            grid=grid,
            in_specs=[q_spec, kv_spec, kv_spec],
            out_specs=o_spec,
            scratch_shapes=[pltpu.VMEM((tq, 1), jnp.float32),   # m (running max)
                            pltpu.VMEM((tq, 1), jnp.float32),   # l (running sum)
                            pltpu.VMEM((tq, d), jnp.float32)],  # acc
        ),
        compiler_params=pltpu.CompilerParams(
            dimension_semantics=("parallel", "parallel", "arbitrary"),
            vmem_limit_bytes=40 * 1024 * 1024),   # safe on v7x's 64 MiB
    )(q, k, v)


# --------------------------------------------------------------------------
# Public wrapper (matches CausalAttention.forward in eval mode).
# --------------------------------------------------------------------------
def causal_attention(x, wq, wk, wv, *, compute_dtype=jnp.bfloat16,
                     exp_dtype=None, tm=None, tq=None, tk=None):
    """x: (B, T, d_in); wq/wk/wv: (d_in, d_out) (pre-transposed vs PyTorch).

    compute_dtype: dtype of Q/K/V fed to the MXU (default bf16; None keeps
    the input dtype, e.g. full fp32 numerics).  Output dtype follows x.
    Returns (B, T, d_out).
    """
    b, t, d_in = x.shape
    d_out = wq.shape[1]
    out_dtype = x.dtype

    # Fold 1/sqrt(d_out) into Wq once (drops the per-tile Q-scaling VPU pass)
    # and fuse the three projection weights into one wide matmul operand.
    scale = float(d_out) ** -0.5
    w_fused = jnp.concatenate([wq * scale, wk, wv], axis=1)   # (d_in, 3*d_out)

    if compute_dtype is None:
        compute_dtype = x.dtype
    x_c = x.astype(compute_dtype)
    w_fused = w_fused.astype(compute_dtype)

    # Stage 1: fused Q/K/V projection over the folded (B*T) row axis.
    rows = b * t
    tm = tm if tm is not None else _pick_tile(rows, 512)
    q2d, k2d, v2d = _qkv_projection(x_c.reshape(rows, d_in), w_fused, d_out,
                                    compute_dtype, tm)
    q = q2d.reshape(b, t, d_out)
    k = k2d.reshape(b, t, d_out)
    v = v2d.reshape(b, t, d_out)

    # bf16 exp only when operands are bf16 and the chip has a bf16 EUP.
    if exp_dtype is None:
        if jnp.dtype(compute_dtype) == jnp.dtype(jnp.bfloat16) and _has_bf16_eup():
            exp_dtype = jnp.bfloat16
        else:
            exp_dtype = jnp.float32

    # Stage 2: flash attention with large KV tiles.
    tq = tq if tq is not None else _pick_tile(t, 512)
    tk = tk if tk is not None else _pick_tile(t, 1024)
    return _flash_attention(q, k, v, out_dtype, tq, tk, exp_dtype)


# --------------------------------------------------------------------------
# Pure-JAX reference and self-test.
# --------------------------------------------------------------------------
def _reference(x, wq, wk, wv):
    hp = lax.Precision.HIGHEST
    q = jnp.einsum("bti,io->bto", x, wq, precision=hp)
    k = jnp.einsum("bti,io->bto", x, wk, precision=hp)
    v = jnp.einsum("bti,io->bto", x, wv, precision=hp)
    s = jnp.einsum("bqo,bko->bqk", q, k, precision=hp)
    t = s.shape[-1]
    mask = jnp.triu(jnp.ones((t, t), dtype=bool), k=1)
    s = jnp.where(mask[None], -jnp.inf, s)
    a = jax.nn.softmax(s / (wq.shape[1] ** 0.5), axis=-1)
    return jnp.einsum("bqk,bko->bqo", a, v, precision=hp)


if __name__ == "__main__":
    # Small, module-consistent shapes: batch=2, seq=8, d_in=32, d_out=32.
    B, T, D_IN, D_OUT = 2, 8, 32, 32
    key = jax.random.PRNGKey(0)
    kx, kq, kk, kv_key = jax.random.split(key, 4)

    x = jax.random.normal(kx, (B, T, D_IN), dtype=jnp.float32)
    # Linear weights stored as (d_in, d_out), i.e. transposed vs PyTorch's
    # (d_out, d_in), so the kernels compute x @ W directly.
    wq = jax.random.normal(kq, (D_IN, D_OUT), dtype=jnp.float32) * (D_IN ** -0.5)
    wk = jax.random.normal(kk, (D_IN, D_OUT), dtype=jnp.float32) * (D_IN ** -0.5)
    wv = jax.random.normal(kv_key, (D_IN, D_OUT), dtype=jnp.float32) * (D_IN ** -0.5)

    ref = _reference(x, wq, wk, wv)

    # 1) fp32 path: matches the PyTorch module's numerics (exact divide in the
    #    softmax finalize, fp32 matmuls with fp32 accumulation).
    out_f32 = jax.block_until_ready(
        causal_attention(x, wq, wk, wv, compute_dtype=None))
    assert out_f32.shape == (B, T, D_OUT)
    err_f32 = float(jnp.max(jnp.abs(out_f32 - ref)))
    assert jnp.allclose(out_f32, ref, atol=1e-2, rtol=1e-2), err_f32

    # 2) default fast path: bf16 Q/K/V into the MXU (flash-attention numerics).
    out_bf16 = jax.block_until_ready(causal_attention(x, wq, wk, wv))
    assert out_bf16.shape == (B, T, D_OUT) and out_bf16.dtype == x.dtype
    err_bf16 = float(jnp.max(jnp.abs(out_bf16 - ref)))
    assert jnp.allclose(out_bf16, ref, atol=5e-2, rtol=5e-2), err_bf16

    print("KERNEL_OK")
</pallas_src>

<mosaic_0001>
module attributes {stable_mosaic.version = 11 : i64} {
  func.func @_qkv_proj_kernel(%arg0: i32, %arg1: memref<16x32xf32, #tpu.memory_space<vmem>>, %arg2: memref<32x96xf32, #tpu.memory_space<vmem>>, %arg3: memref<16x32xf32, #tpu.memory_space<vmem>>, %arg4: memref<16x32xf32, #tpu.memory_space<vmem>>, %arg5: memref<16x32xf32, #tpu.memory_space<vmem>>) attributes {dimension_semantics = [#tpu.dimension_semantics<parallel>], iteration_bounds = array<i64: 1>, scalar_prefetch = 0 : i64, scratch_operands = 0 : i64, tpu.core_type = #tpu.core_type<tc>, window_params = [{transform_indices = @transform_0, window_bounds = array<i64: 16, 32>}, {pipeline_mode = #tpu.pipeline_mode<synchronous>, transform_indices = @transform_1, window_bounds = array<i64: 32, 96>}, {transform_indices = @transform_2, window_bounds = array<i64: 16, 32>}, {transform_indices = @transform_3, window_bounds = array<i64: 16, 32>}, {transform_indices = @transform_4, window_bounds = array<i64: 16, 32>}]} {
    %c0 = arith.constant 0 : index
    %c0_0 = arith.constant 0 : index
    %0 = vector.load %arg1[%c0, %c0_0] : memref<16x32xf32, #tpu.memory_space<vmem>>, vector<16x32xf32>
    %c0_1 = arith.constant 0 : index
    %c0_2 = arith.constant 0 : index
    %1 = vector.load %arg2[%c0_1, %c0_2] : memref<32x96xf32, #tpu.memory_space<vmem>>, vector<32x96xf32>
    %cst = arith.constant dense<0.000000e+00> : vector<16x96xf32>
    %2 = tpu.matmul %0, %1, %cst {dimension_numbers = #tpu.dot_dimension_numbers<[1], [0], [0], [1], [0, 0, 1, 1], [], []>} : vector<16x32xf32>, vector<32x96xf32>, vector<16x96xf32> -> vector<16x96xf32>
    %3 = vector.extract_strided_slice %2 {offsets = [0, 0], sizes = [16, 32], strides = [1, 1]} : vector<16x96xf32> to vector<16x32xf32>
    %c0_3 = arith.constant 0 : index
    %c0_4 = arith.constant 0 : index
    %4 = vector.load %arg3[%c0_3, %c0_4] : memref<16x32xf32, #tpu.memory_space<vmem>>, vector<16x32xf32>
    tpu.vector_store %arg3[%c0_3, %c0_4], %3 {strides = array<i32>} : memref<16x32xf32, #tpu.memory_space<vmem>>, vector<16x32xf32>,
    %5 = vector.extract_strided_slice %2 {offsets = [0, 32], sizes = [16, 32], strides = [1, 1]} : vector<16x96xf32> to vector<16x32xf32>
    %c0_5 = arith.constant 0 : index
    %c0_6 = arith.constant 0 : index
    %6 = vector.load %arg4[%c0_5, %c0_6] : memref<16x32xf32, #tpu.memory_space<vmem>>, vector<16x32xf32>
    tpu.vector_store %arg4[%c0_5, %c0_6], %5 {strides = array<i32>} : memref<16x32xf32, #tpu.memory_space<vmem>>, vector<16x32xf32>,
    %7 = vector.extract_strided_slice %2 {offsets = [0, 64], sizes = [16, 32], strides = [1, 1]} : vector<16x96xf32> to vector<16x32xf32>
    %c0_7 = arith.constant 0 : index
    %c0_8 = arith.constant 0 : index
    %8 = vector.load %arg5[%c0_7, %c0_8] : memref<16x32xf32, #tpu.memory_space<vmem>>, vector<16x32xf32>
    tpu.vector_store %arg5[%c0_7, %c0_8], %7 {strides = array<i32>} : memref<16x32xf32, #tpu.memory_space<vmem>>, vector<16x32xf32>,
    return
  }
  func.func @transform_0(%arg0: i32) -> (i32, i32) {
    %c0_i32 = arith.constant 0 : i32
    %c0_i32_0 = arith.constant 0 : i32
    return %arg0, %c0_i32 : i32, i32
  }
  func.func @transform_1(%arg0: i32) -> (i32, i32) {
    %c0_i32 = arith.constant 0 : i32
    %c0_i32_0 = arith.constant 0 : i32
    %c0_i32_1 = arith.constant 0 : i32
    return %c0_i32, %c0_i32_0 : i32, i32
  }
  func.func @transform_2(%arg0: i32) -> (i32, i32) {
    %c0_i32 = arith.constant 0 : i32
    %c0_i32_0 = arith.constant 0 : i32
    return %arg0, %c0_i32 : i32, i32
  }
  func.func @transform_3(%arg0: i32) -> (i32, i32) {
    %c0_i32 = arith.constant 0 : i32
    %c0_i32_0 = arith.constant 0 : i32
    return %arg0, %c0_i32 : i32, i32
  }
  func.func @transform_4(%arg0: i32) -> (i32, i32) {
    %c0_i32 = arith.constant 0 : i32
    %c0_i32_0 = arith.constant 0 : i32
    return %arg0, %c0_i32 : i32, i32
  }
}

</mosaic_0001>

<bundles_post_ra>
// kernel: tpu_custom_call.1
= control target key start
LH: loop header
LB: loop body
LE: loop exit
PB: predicated region body
PF: predicated region fallthrough
CT: control target
= control target key end

     0   :  { %10 = vsyncpa [#allocation3], 0  ;;  %s479_s0 = inlined_call_operand.hbm [shape: f32[16,32], index: 0, kind: input, shape index: {}]   ;;  %s480_s1 = inlined_call_operand.hbm [shape: f32[32,96], index: 1, kind: input, shape index: {}]   ;;  %s481_s2 = inlined_call_operand.hbm [shape: f32[16,32], index: 2, kind: output, shape index: {0}]   ;;  %s482_s3 = inlined_call_operand.hbm [shape: f32[16,32], index: 3, kind: output, shape index: {1}]   ;;  %s483_s4 = inlined_call_operand.hbm [shape: f32[16,32], index: 4, kind: output, shape index: {2}]  }
   0x1   :  { %11 = vsyncpa [#allocation6], 0 }
   0x2   :  { %12 = vsyncpa [#allocation4], 0 }
   0x3   :  { %13 = vsyncpa [#allocation9], 0  ;;  %s355_s15 = smov [#allocation2]   ;;  %s237_s19 = scalar_lea.hbm %s479_s0, 256 }
   0x4   :  { %s19_s16 = sshll.u32 %s355_s15, 4  ;;  %p238_p0 = scmp.ne.s32.totalorder %s479_s0, %s237_s19  ;;  %s20_s16 = int_to_ptr.vmem [resolvable:$true] %s19_s16 }
   0x5   :  { %p241_p1 = scmp.lt.u32.totalorder %s237_s19, %s479_s0 }
   0x7   :  { %p243_p2 = pnand %p241_p1, %p238_p0 }
   0x9   :  { %246 = shalt.err (!%p243_p2)
}
   0xa   :  { %s247_s24 = scalar_lea.vmem %s20_s16, 256  ;;  %p252_p4 = scmp.lt.s32.totalorder %s20_s16, %s20_s16 }
   0xb   :  { %p248_p3 = scmp.ne.s32.totalorder %s20_s16, %s247_s24  ;;  %p253_p5 = scmp.lt.s32.totalorder %s247_s24, %s247_s24 }
   0xd   :  { %p254_p6 = por %p253_p5, %p252_p4 }
   0xf   :  { %p255_p7 = pnand %p254_p6, %p248_p3 }
  0x11   :  { %258 = shalt.err (!%p255_p7)
}
  0x12   :  { %s356_s25 = smov 128   ;;  %s357_s26 = smov 8  }
  0x13   :  { %25 = dma.hbm_to_vmem [thread:$0]  %s479_s0, 256, %s20_s16, [#allocation3], %s356_s25, %s356_s25, %s357_s26  }
  0x14   :  { %s358_s29 = smov [#allocation5]   ;;  %s259_s7 = scalar_lea.hbm %s480_s1, 512 }
  0x15   :  { %s31_s30 = sshll.u32 %s358_s29, 4  ;;  %p260_p8 = scmp.ne.s32.totalorder %s480_s1, %s259_s7  ;;  %s32_s30 = int_to_ptr.vmem [resolvable:$true] %s31_s30 }
  0x16   :  { %p263_p9 = scmp.lt.u32.totalorder %s259_s7, %s480_s1 }
  0x18   :  { %p265_p10 = pnand %p263_p9, %p260_p8 }
  0x1a   :  { %268 = shalt.err (!%p265_p10)
}
  0x1b   :  { %s269_s12 = scalar_lea.vmem %s32_s30, 512  ;;  %p274_p12 = scmp.lt.s32.totalorder %s32_s30, %s32_s30 }
  0x1c   :  { %p270_p11 = scmp.ne.s32.totalorder %s32_s30, %s269_s12  ;;  %p275_p13 = scmp.lt.s32.totalorder %s269_s12, %s269_s12 }
  0x1e   :  { %p276_p0 = por %p275_p13, %p274_p12 }
  0x20   :  { %p277_p1 = pnand %p276_p0, %p270_p11 }
  0x22   :  { %280 = shalt.err (!%p277_p1)
}
  0x23   :  { %37 = dma.hbm_to_vmem [thread:$0]  %s480_s1, 512, %s32_s30, [#allocation6], %s356_s25, %s356_s25, %s357_s26  }
  0x24   :  { %347 = dma.done.wait [#allocation3], 256  }
  0x25   :  { %348 = vsyncadd [#allocation3], 4294967040 }
  0x26   :  { %349 = dma.done.wait [#allocation6], 512  }
  0x27   :  { %350 = vsyncadd [#allocation6], 4294966784  ;;  %vm50_vm0 = vcmask 261120   ;;  %v46_v0 = vld [vmem:[#allocation5] sm:$0xff]  ;;  %v47_v1 = vld [vmem:[#allocation5 + $0x8] sm:$0xff]  ;;  %s359_s1 = smov [#allocation7]  }
  0x28   :  { %v48_v2 = vld [vmem:[#allocation5 + $0x10] sm:$0xff]  ;;  %v220_v3 = vpack.c.bf16 %v47_v1, %v46_v0  ;;  %v49_v4 = vld [vmem:[#allocation5 + $0x18] sm:$0xff]  ;;  %s157_s14 = sshll.u32 %s359_s1, 4  ;;  %s360_s15 = smov 64   ;;  %s158_s14 = int_to_ptr.vmem [resolvable:$true] %s157_s14 }
  0x29   :  { %v44_v5 = vld [vmem:[#allocation2] sm:$0xff]  ;;  %v224_v6 = vpack.c.bf16 %v49_v4, %v48_v2  ;;  %v45_v7 = vld [vmem:[#allocation2 + $0x8] sm:$0xff]  ;;  %s361_s16 = smov 96   ;;  %s281_s17 = scalar_lea.vmem %s158_s14, 256 }
  0x2a   :  { %217 = vmatprep.mubr.msk.f32.mxu0 %vm50_vm0, %v44_v5  ;;  %221 = vmatprep.subr.bf16.mxu0 %v220_v3  ;;  %p282_p2 = scmp.ne.s32.totalorder %s158_s14, %s281_s17  ;;  %p286_p3 = scmp.lt.s32.totalorder %s158_s14, %s158_s14 }
  0x2b   :  { %223 = vmatpush3.bf16.msra.mxu0 %v220_v3  ;;  %p287_p4 = scmp.lt.s32.totalorder %s281_s17, %s281_s17 }
  0x2c   :  { %225 = vmatprep.subr.bf16.mxu0 %v224_v6 }
  0x2d   :  { %p288_p5 = por %p287_p4, %p286_p3 }
  0x2f   :  { %227 = vmatpush3.bf16.msra.mxu0 %v224_v6  ;;  %p289_p6 = pnand %p288_p5, %p282_p2 }
  0x32   :  { %218 = vmatmul.mubr.msk.f32.vlgmr.msra.gmra.mrb[0].mxu0 %vm50_vm0, %v45_v7 }
 0x105   :  { %v219_v8 = vpop.f32.mrb[0].mxu0 }
 0x106   :  { %133 = vst.msk [vmem:[#allocation7 + $0x8] sm:$0xff] %vm50_vm0, %v219_v8  ;;  %v123_v9 = vpop.f32.mrb[1].mxu0 }
 0x107   :  { %132 = vst.msk [vmem:[#allocation7] sm:$0xff] %vm50_vm0, %v123_v9  ;;  %144 = vrot.lane.b32.xlu1 %v123_v9, %s360_s15  ;;  %136 = vrot.lane.b32.xlu0 %v123_v9, %s361_s16 }
 0x108   :  { %292 = shalt.err (!%p289_p6)
}
 0x109   :  { %s293_s20 = scalar_lea.hbm %s481_s2, 256 }
 0x10a   :  { %p294_p7 = scmp.ne.s32.totalorder %s481_s2, %s293_s20  ;;  %p297_p8 = scmp.lt.u32.totalorder %s293_s20, %s481_s2 }
 0x10c   :  { %p299_p9 = pnand %p297_p8, %p294_p7 }
 0x10e   :  { %302 = shalt.err (!%p299_p9)
}
 0x10f   :  { %163 = dma.vmem_to_hbm [thread:$0]  %s158_s14, 256, %s481_s2, [#allocation4], %s356_s25, %s356_s25, %s357_s26  }
 0x110   :  { %146 = vrot.lane.b32.xlu1 %v219_v8, %s360_s15  ;;  %138 = vrot.lane.b32.xlu0 %v219_v8, %s361_s16  ;;  %s362_s29 = smov [#allocation8]   ;;  %s363_s5 = smov [#allocation10]  }
 0x111   :  { %s169_s30 = sshll.u32 %s362_s29, 4  ;;  %s181_s6 = sshll.u32 %s363_s5, 4  ;;  %s170_s30 = int_to_ptr.vmem [resolvable:$true] %s169_s30  ;;  %s440_s6 = int_to_ptr.vmem [resolvable:$true] %s181_s6 }
 0x112   :  { %s303_s2 = scalar_lea.vmem %s170_s30, 256  ;;  %p308_p11 = scmp.lt.s32.totalorder %s170_s30, %s170_s30 }
 0x113   :  { %p304_p10 = scmp.ne.s32.totalorder %s170_s30, %s303_s2  ;;  %p309_p12 = scmp.lt.s32.totalorder %s303_s2, %s303_s2 }
 0x115   :  { %p310_p13 = por %p309_p12, %p308_p11 }
 0x117   :  { %p311_p0 = pnand %p310_p13, %p304_p10 }
 0x179   :  { %v145_v10 = vpop.permute.xlu1 %144  ;;  %v137_v11 = vpop.permute.xlu0 %136 }
 0x17a   :  { %150 = vst.msk [vmem:[#allocation10] sm:$0xff] %vm50_vm0, %v145_v10  ;;  %142 = vst.msk [vmem:[#allocation8] sm:$0xff] %vm50_vm0, %v137_v11 }
 0x182   :  { %v147_v12 = vpop.permute.xlu1 %146  ;;  %v139_v13 = vpop.permute.xlu0 %138 }
 0x183   :  { %151 = vst.msk [vmem:[#allocation10 + $0x8] sm:$0xff] %vm50_vm0, %v147_v12  ;;  %143 = vst.msk [vmem:[#allocation8 + $0x8] sm:$0xff] %vm50_vm0, %v139_v13 }
 0x184   :  { %314 = shalt.err (!%p311_p0)
}
 0x185   :  { %s315_s9 = scalar_lea.hbm %s482_s3, 256 }
 0x186   :  { %p316_p1 = scmp.ne.s32.totalorder %s482_s3, %s315_s9  ;;  %p319_p2 = scmp.lt.u32.totalorder %s315_s9, %s482_s3 }
 0x188   :  { %p321_p3 = pnand %p319_p2, %p316_p1 }
 0x18a   :  { %324 = shalt.err (!%p321_p3)
}
 0x18b   :  { %175 = dma.vmem_to_hbm [thread:$0]  %s170_s30, 256, %s482_s3, [#allocation9], %s356_s25, %s356_s25, %s357_s26  }
 0x18c   :  { %s325_s14 = scalar_lea.vmem %s440_s6, 256  ;;  %p330_p5 = scmp.lt.s32.totalorder %s440_s6, %s440_s6 }
 0x18d   :  { %p326_p4 = scmp.ne.s32.totalorder %s440_s6, %s325_s14  ;;  %p331_p6 = scmp.lt.s32.totalorder %s325_s14, %s325_s14 }
 0x18f   :  { %p332_p7 = por %p331_p6, %p330_p5 }
 0x191   :  { %p333_p8 = pnand %p332_p7, %p326_p4 }
 0x193   :  { %336 = shalt.err (!%p333_p8)
}
 0x194   :  { %s337_s17 = scalar_lea.hbm %s483_s4, 256 }
 0x195   :  { %p338_p9 = scmp.ne.s32.totalorder %s483_s4, %s337_s17  ;;  %p341_p10 = scmp.lt.u32.totalorder %s337_s17, %s483_s4 }
 0x197   :  { %p343_p11 = pnand %p341_p10, %p338_p9 }
 0x199   :  { %346 = shalt.err (!%p343_p11)
}
 0x19a   :  { %187 = dma.vmem_to_hbm [thread:$0]  %s440_s6, 256, %s483_s4, [#allocation9], %s356_s25, %s356_s25, %s357_s26  }
 0x19b   :  { %351 = dma.done.wait [#allocation4], 256  }
 0x19c   :  { %352 = vsyncadd [#allocation4], 4294967040 }
 0x19d   :  { %353 = dma.done.wait [#allocation9], 512  }
 0x19e   :  { %354 = vsyncadd [#allocation9], 4294966784 }
 0x19f   :  { %197 = vsyncpa [#allocation3], 1 }
 0x1a0   :  { %198 = vsyncpa [#allocation6], 1 }
 0x1a1   :  { %199 = vsyncpa [#allocation4], 1 }
 0x1a2   :  { %200 = vsyncpa [#allocation9], 1 }

</bundles_post_ra>
